<compile_context>
chip_gen: v5e
topology: v5e:2x2
jax: 0.10.0
libtpu: 0.0.40
codegen_flags: <defaults>
</compile_context>

<pallas_src>
import jax
import jax.numpy as jnp
from jax.experimental import pallas as pl
from jax.experimental.pallas import tpu as pltpu

LANE = 128
SUBLANE = 8


def _round_up(x, m):
    return (x + m - 1) // m * m


def actor_kernel(x_ref, w1_ref, b1_ref, w2_ref, b2_ref, w3_ref, b3_ref, o_ref):
    wdt = w1_ref.dtype                                   # f32 or bf16 (MXU operands only)
    x = x_ref[...]                                       # [TB, S] f32
    h1 = jnp.dot(x.astype(wdt), w1_ref[...],
                 preferred_element_type=jnp.float32) + b1_ref[...]
    h1 = jnp.maximum(h1, 0.0)                            # ReLU (f32, VPU)
    h2 = jnp.dot(h1.astype(wdt), w2_ref[...],
                 preferred_element_type=jnp.float32) + b2_ref[...]
    h2 = jnp.maximum(h2, 0.0)                            # ReLU (f32, VPU)
    a = jnp.dot(h2.astype(wdt), w3_ref[...],
                preferred_element_type=jnp.float32) + b3_ref[...]   # [TB, A=128]
    act = o_ref.shape[-1]                                # real action_dim
    o_ref[...] = jnp.tanh(a[:, :act]).astype(o_ref.dtype)           # Tanh (EUP), masked store


def prepare_params(params, use_bf16=False):
    """One-time glue (NOT per forward call): transpose PyTorch [out, in] weights
    to [in, out], zero-pad hidden/action dims to lane-dense multiples of 128,
    reshape biases to [1, out], optionally cast weights (only) to bf16."""
    state_dim = params["w1"].shape[1]
    hidden_dim = params["w1"].shape[0]
    action_dim = params["w3"].shape[0]
    H = _round_up(hidden_dim, LANE)
    A = _round_up(action_dim, LANE)
    wdt = jnp.bfloat16 if use_bf16 else jnp.float32

    def pad2(x, rows, cols):
        return jnp.pad(x, ((0, rows - x.shape[0]), (0, cols - x.shape[1])))

    w1 = pad2(params["w1"].T, state_dim, H).astype(wdt)   # [S, H]
    w2 = pad2(params["w2"].T, H, H).astype(wdt)           # [H, H]
    w3 = pad2(params["w3"].T, H, A).astype(wdt)           # [H, A]
    b1 = pad2(params["b1"].reshape(1, -1), 1, H)          # [1, H] f32
    b2 = pad2(params["b2"].reshape(1, -1), 1, H)          # [1, H] f32
    b3 = pad2(params["b3"].reshape(1, -1), 1, A)          # [1, A] f32
    prep = (w1, b1, w2, b2, w3, b3)
    return jax.tree_util.tree_map(jax.device_put, prep), action_dim


def simple_actor_forward(state, prep, action_dim, *, block_b=2048):
    """state: [B, state_dim] float32.  prep: tuple from prepare_params()."""
    w1, b1, w2, b2, w3, b3 = prep
    B, S = state.shape
    H = w1.shape[1]
    A = w3.shape[1]

    # Batch tile: multiple of 8 sublanes, capped at block_b.
    TB = min(_round_up(block_b, SUBLANE), _round_up(B, SUBLANE))
    # v7x megacore: when the batch is large enough, keep >= MIN_TILES grid
    # steps so the "parallel" axis can shard tiles across both TensorCores.
    MIN_TILES = 4
    if B >= MIN_TILES * SUBLANE:
        TB = min(TB, _round_up(pl.cdiv(B, MIN_TILES), SUBLANE))
    grid = (pl.cdiv(B, TB),)   # partial final tile: reads clamped, writes masked

    const = lambda i: (0, 0)   # weights/biases: same block every step -> VMEM-resident

    flops = 2 * B * (S * H + H * H + H * A)
    bytes_accessed = int(
        state.size * state.dtype.itemsize
        + sum(int(x.size) * x.dtype.itemsize for x in prep)
        + B * action_dim * 4)

    out = pl.pallas_call(
        actor_kernel,
        out_shape=jax.ShapeDtypeStruct((B, action_dim), jnp.float32),
        grid=grid,
        in_specs=[
            pl.BlockSpec((TB, S), lambda i: (i, 0)),   # state streamed over batch
            pl.BlockSpec((S, H), const),
            pl.BlockSpec((1, H), const),
            pl.BlockSpec((H, H), const),
            pl.BlockSpec((1, H), const),
            pl.BlockSpec((H, A), const),
            pl.BlockSpec((1, A), const),
        ],
        out_specs=pl.BlockSpec((TB, action_dim), lambda i: (i, 0)),  # no HBM lane padding
        compiler_params=pltpu.CompilerParams(
            dimension_semantics=("parallel",),          # shard batch tiles over TCs
        ),
        cost_estimate=pl.CostEstimate(
            flops=int(flops),
            transcendentals=int(B * action_dim),
            bytes_accessed=bytes_accessed),
    )(state, w1, b1, w2, b2, w3, b3)
    return out


def init_params(key, state_dim, action_dim, hidden_dim=64):
    """Deterministic init mimicking nn.Linear's U(-1/sqrt(fan_in), 1/sqrt(fan_in)),
    stored PyTorch-style ([out, in]) like the original module."""
    ks = jax.random.split(key, 6)

    def lin(kw, kb, fan_in, fan_out):
        bound = 1.0 / jnp.sqrt(fan_in)
        w = jax.random.uniform(kw, (fan_out, fan_in), jnp.float32, -bound, bound)
        b = jax.random.uniform(kb, (fan_out,), jnp.float32, -bound, bound)
        return w, b

    w1, b1 = lin(ks[0], ks[1], state_dim, hidden_dim)
    w2, b2 = lin(ks[2], ks[3], hidden_dim, hidden_dim)
    w3, b3 = lin(ks[4], ks[5], hidden_dim, action_dim)
    return {"w1": w1, "b1": b1, "w2": w2, "b2": b2, "w3": w3, "b3": b3}


def reference_forward(state, params):
    h1 = jnp.maximum(state @ params["w1"].T + params["b1"], 0.0)
    h2 = jnp.maximum(h1 @ params["w2"].T + params["b2"], 0.0)
    return jnp.tanh(h2 @ params["w3"].T + params["b3"])


if __name__ == "__main__":
    state_dim, action_dim, hidden_dim = 8, 4, 64

    key = jax.random.PRNGKey(0)
    k_state, k_params, k_big, k_rag = jax.random.split(key, 4)
    params = init_params(k_params, state_dim, action_dim, hidden_dim)
    prep, adim = prepare_params(params)   # one-time transpose + pad (f32)

    # Small batch (B < sublane): single padded tile, masked writes.
    state = jax.random.normal(k_state, (2, state_dim), jnp.float32)
    out = jax.block_until_ready(simple_actor_forward(state, prep, adim))
    ref = reference_forward(state, params)
    assert out.shape == (2, action_dim)
    assert jnp.allclose(out, ref, atol=1e-5, rtol=1e-5), "mismatch vs JAX reference (B=2)"

    # Larger batch, small block -> multi-step grid with exact tiles.
    big_state = jax.random.normal(k_big, (64, state_dim), jnp.float32)
    out_big = jax.block_until_ready(
        simple_actor_forward(big_state, prep, adim, block_b=16))
    ref_big = reference_forward(big_state, params)
    assert out_big.shape == (64, action_dim)
    assert jnp.allclose(out_big, ref_big, atol=1e-5, rtol=1e-5), "mismatch vs JAX reference (B=64)"

    # Ragged batch -> partial final tile (read-clamped, write-masked).
    rag_state = jax.random.normal(k_rag, (50, state_dim), jnp.float32)
    out_rag = jax.block_until_ready(
        simple_actor_forward(rag_state, prep, adim, block_b=16))
    ref_rag = reference_forward(rag_state, params)
    assert out_rag.shape == (50, action_dim)
    assert jnp.allclose(out_rag, ref_rag, atol=1e-5, rtol=1e-5), "mismatch vs JAX reference (B=50)"

    # bf16 MXU-operand path (weights bf16, elementwise f32): relaxed tolerance.
    prep_bf16, _ = prepare_params(params, use_bf16=True)
    out_bf16 = jax.block_until_ready(simple_actor_forward(big_state, prep_bf16, adim))
    assert out_bf16.shape == (64, action_dim)
    assert jnp.allclose(out_bf16, ref_big, atol=5e-2), "mismatch vs JAX reference (bf16)"

    print("KERNEL_OK")
</pallas_src>

<mosaic_0001>
module attributes {stable_mosaic.version = 11 : i64} {
  func.func @actor_kernel(%arg0: i32, %arg1: memref<8x8xf32, #tpu.memory_space<vmem>>, %arg2: memref<8x128xf32, #tpu.memory_space<vmem>>, %arg3: memref<1x128xf32, #tpu.memory_space<vmem>>, %arg4: memref<128x128xf32, #tpu.memory_space<vmem>>, %arg5: memref<1x128xf32, #tpu.memory_space<vmem>>, %arg6: memref<128x128xf32, #tpu.memory_space<vmem>>, %arg7: memref<1x128xf32, #tpu.memory_space<vmem>>, %arg8: memref<8x4xf32, #tpu.memory_space<vmem>>) attributes {dimension_semantics = [#tpu.dimension_semantics<parallel>], iteration_bounds = array<i64: 1>, scalar_prefetch = 0 : i64, scratch_operands = 0 : i64, tpu.core_type = #tpu.core_type<tc>, window_params = [{transform_indices = @transform_0, window_bounds = array<i64: 8, 8>}, {pipeline_mode = #tpu.pipeline_mode<synchronous>, transform_indices = @transform_1, window_bounds = array<i64: 8, 128>}, {pipeline_mode = #tpu.pipeline_mode<synchronous>, transform_indices = @transform_2, window_bounds = array<i64: 1, 128>}, {pipeline_mode = #tpu.pipeline_mode<synchronous>, transform_indices = @transform_3, window_bounds = array<i64: 128, 128>}, {pipeline_mode = #tpu.pipeline_mode<synchronous>, transform_indices = @transform_4, window_bounds = array<i64: 1, 128>}, {pipeline_mode = #tpu.pipeline_mode<synchronous>, transform_indices = @transform_5, window_bounds = array<i64: 128, 128>}, {pipeline_mode = #tpu.pipeline_mode<synchronous>, transform_indices = @transform_6, window_bounds = array<i64: 1, 128>}, {transform_indices = @transform_7, window_bounds = array<i64: 8, 4>}]} {
    %c0 = arith.constant 0 : index
    %c0_0 = arith.constant 0 : index
    %0 = vector.load %arg1[%c0, %c0_0] : memref<8x8xf32, #tpu.memory_space<vmem>>, vector<8x8xf32>
    %c0_1 = arith.constant 0 : index
    %c0_2 = arith.constant 0 : index
    %1 = vector.load %arg2[%c0_1, %c0_2] : memref<8x128xf32, #tpu.memory_space<vmem>>, vector<8x128xf32>
    %cst = arith.constant dense<0.000000e+00> : vector<8x128xf32>
    %2 = tpu.matmul %0, %1, %cst {dimension_numbers = #tpu.dot_dimension_numbers<[1], [0], [0], [1], [0, 0, 1, 1], [], []>} : vector<8x8xf32>, vector<8x128xf32>, vector<8x128xf32> -> vector<8x128xf32>
    %c0_3 = arith.constant 0 : index
    %c0_4 = arith.constant 0 : index
    %3 = vector.load %arg3[%c0_3, %c0_4] : memref<1x128xf32, #tpu.memory_space<vmem>>, vector<1x128xf32>
    %4 = vector.broadcast %3 : vector<1x128xf32> to vector<8x128xf32>
    %5 = arith.addf %2, %4 : vector<8x128xf32>
    %cst_5 = arith.constant 0.000000e+00 : f32
    %6 = vector.broadcast %cst_5 : f32 to vector<8x128xf32>
    %7 = arith.maximumf %5, %6 : vector<8x128xf32>
    %c0_6 = arith.constant 0 : index
    %c0_7 = arith.constant 0 : index
    %8 = vector.load %arg4[%c0_6, %c0_7] : memref<128x128xf32, #tpu.memory_space<vmem>>, vector<128x128xf32>
    %cst_8 = arith.constant dense<0.000000e+00> : vector<8x128xf32>
    %9 = tpu.matmul %7, %8, %cst_8 {dimension_numbers = #tpu.dot_dimension_numbers<[1], [0], [0], [1], [0, 0, 1, 1], [], []>} : vector<8x128xf32>, vector<128x128xf32>, vector<8x128xf32> -> vector<8x128xf32>
    %c0_9 = arith.constant 0 : index
    %c0_10 = arith.constant 0 : index
    %10 = vector.load %arg5[%c0_9, %c0_10] : memref<1x128xf32, #tpu.memory_space<vmem>>, vector<1x128xf32>
    %11 = vector.broadcast %10 : vector<1x128xf32> to vector<8x128xf32>
    %12 = arith.addf %9, %11 : vector<8x128xf32>
    %cst_11 = arith.constant 0.000000e+00 : f32
    %13 = vector.broadcast %cst_11 : f32 to vector<8x128xf32>
    %14 = arith.maximumf %12, %13 : vector<8x128xf32>
    %c0_12 = arith.constant 0 : index
    %c0_13 = arith.constant 0 : index
    %15 = vector.load %arg6[%c0_12, %c0_13] : memref<128x128xf32, #tpu.memory_space<vmem>>, vector<128x128xf32>
    %cst_14 = arith.constant dense<0.000000e+00> : vector<8x128xf32>
    %16 = tpu.matmul %14, %15, %cst_14 {dimension_numbers = #tpu.dot_dimension_numbers<[1], [0], [0], [1], [0, 0, 1, 1], [], []>} : vector<8x128xf32>, vector<128x128xf32>, vector<8x128xf32> -> vector<8x128xf32>
    %c0_15 = arith.constant 0 : index
    %c0_16 = arith.constant 0 : index
    %17 = vector.load %arg7[%c0_15, %c0_16] : memref<1x128xf32, #tpu.memory_space<vmem>>, vector<1x128xf32>
    %18 = vector.broadcast %17 : vector<1x128xf32> to vector<8x128xf32>
    %19 = arith.addf %16, %18 : vector<8x128xf32>
    %20 = vector.extract_strided_slice %19 {offsets = [0, 0], sizes = [8, 4], strides = [1, 1]} : vector<8x128xf32> to vector<8x4xf32>
    %21 = math.tanh %20 : vector<8x4xf32>
    %c0_17 = arith.constant 0 : index
    %c0_18 = arith.constant 0 : index
    %22 = vector.load %arg8[%c0_17, %c0_18] : memref<8x4xf32, #tpu.memory_space<vmem>>, vector<8x4xf32>
    tpu.vector_store %arg8[%c0_17, %c0_18], %21 {strides = array<i32>} : memref<8x4xf32, #tpu.memory_space<vmem>>, vector<8x4xf32>,
    return
  }
  func.func @transform_0(%arg0: i32) -> (i32, i32) {
    %c0_i32 = arith.constant 0 : i32
    %c0_i32_0 = arith.constant 0 : i32
    return %arg0, %c0_i32 : i32, i32
  }
  func.func @transform_1(%arg0: i32) -> (i32, i32) {
    %c0_i32 = arith.constant 0 : i32
    %c0_i32_0 = arith.constant 0 : i32
    %c0_i32_1 = arith.constant 0 : i32
    return %c0_i32, %c0_i32_0 : i32, i32
  }
  func.func @transform_2(%arg0: i32) -> (i32, i32) {
    %c0_i32 = arith.constant 0 : i32
    %c0_i32_0 = arith.constant 0 : i32
    %c0_i32_1 = arith.constant 0 : i32
    return %c0_i32, %c0_i32_0 : i32, i32
  }
  func.func @transform_3(%arg0: i32) -> (i32, i32) {
    %c0_i32 = arith.constant 0 : i32
    %c0_i32_0 = arith.constant 0 : i32
    %c0_i32_1 = arith.constant 0 : i32
    return %c0_i32, %c0_i32_0 : i32, i32
  }
  func.func @transform_4(%arg0: i32) -> (i32, i32) {
    %c0_i32 = arith.constant 0 : i32
    %c0_i32_0 = arith.constant 0 : i32
    %c0_i32_1 = arith.constant 0 : i32
    return %c0_i32, %c0_i32_0 : i32, i32
  }
  func.func @transform_5(%arg0: i32) -> (i32, i32) {
    %c0_i32 = arith.constant 0 : i32
    %c0_i32_0 = arith.constant 0 : i32
    %c0_i32_1 = arith.constant 0 : i32
    return %c0_i32, %c0_i32_0 : i32, i32
  }
  func.func @transform_6(%arg0: i32) -> (i32, i32) {
    %c0_i32 = arith.constant 0 : i32
    %c0_i32_0 = arith.constant 0 : i32
    %c0_i32_1 = arith.constant 0 : i32
    return %c0_i32, %c0_i32_0 : i32, i32
  }
  func.func @transform_7(%arg0: i32) -> (i32, i32) {
    %c0_i32 = arith.constant 0 : i32
    %c0_i32_0 = arith.constant 0 : i32
    return %arg0, %c0_i32 : i32, i32
  }
}

</mosaic_0001>

<bundles_post_ra>
// kernel: tpu_custom_call.1
= control target key start
LH: loop header
LB: loop body
LE: loop exit
PB: predicated region body
PF: predicated region fallthrough
CT: control target
= control target key end

     0   :  { %12 = vsyncpa [#allocation3], 0  ;;  %s446_s0 = inlined_call_operand.hbm [shape: f32[2,8], index: 0, kind: input, shape index: {}]   ;;  %s447_s1 = inlined_call_operand.hbm [shape: f32[8,128], index: 1, kind: input, shape index: {}]   ;;  %s448_s2 = inlined_call_operand.vmem [shape: f32[1,128], index: 2, kind: input, shape index: {}]   ;;  %s449_s3 = inlined_call_operand.hbm [shape: f32[128,128], index: 3, kind: input, shape index: {}]   ;;  %s450_s4 = inlined_call_operand.vmem [shape: f32[1,128], index: 4, kind: input, shape index: {}]   ;;  %s451_s5 = inlined_call_operand.hbm [shape: f32[128,128], index: 5, kind: input, shape index: {}]   ;;  %s452_s6 = inlined_call_operand.vmem [shape: f32[1,128], index: 6, kind: input, shape index: {}]   ;;  %s453_s7 = inlined_call_operand.hbm [shape: f32[2,4], index: 7, kind: output, shape index: {}]  }
   0x1   :  { %13 = vsyncpa [#allocation6], 0 }
   0x2   :  { %14 = vsyncpa [#allocation9], 0 }
   0x3   :  { %15 = vsyncpa [#allocation4], 0  ;;  %s34_s26 = sshll.u32 %s447_s1, 4  ;;  %s35_s26 = int_to_ptr.hbm [resolvable:$true] %s34_s26 }
   0x4   :  { %19 = vsyncadd [#allocation3], 96  ;;  %s367_s27 = smov [#allocation5]   ;;  %s20_s8 = sshll.u32 %s446_s0, 4  ;;  %s21_s8 = int_to_ptr.hbm [resolvable:$true] %s20_s8 }
   0x5   :  { %s36_s28 = sshll.u32 %s367_s27, 4  ;;  %s368_s9 = smov [#allocation2]   ;;  %s37_s28 = int_to_ptr.vmem [resolvable:$true] %s36_s28 }
   0x6   :  { %39 = dma.hbm_to_vmem [thread:$0]  %s35_s26, 128, %s37_s28, [#allocation6]  }
   0x7   :  { %s22_s10 = sshll.u32 %s368_s9, 4  ;;  %s369_s11 = smov 32   ;;  %s23_s10 = int_to_ptr.vmem [resolvable:$true] %s22_s10 }
   0x8   :  { %s370_s12 = smov 2   ;;  %s46_s14 = sshll.u32 %s449_s3, 4  ;;  %s47_s14 = int_to_ptr.hbm [resolvable:$true] %s46_s14 }
   0x9   :  { %28 = dma.hbm_to_vmem [thread:$0]  %s21_s8, 32, %s23_s10, [#allocation3], %s369_s11, %s369_s11, %s370_s12  }
   0xa   :  { %s371_s15 = smov [#allocation7]   ;;  %s61_s18 = sshll.u32 %s451_s5, 4  ;;  %s62_s18 = int_to_ptr.hbm [resolvable:$true] %s61_s18 }
   0xb   :  { %s48_s16 = sshll.u32 %s371_s15, 4  ;;  %s372_s19 = smov 128   ;;  %s49_s16 = int_to_ptr.vmem [resolvable:$true] %s48_s16 }
   0xc   :  { %s373_s20 = smov 8   ;;  %s374_s21 = smov [#allocation8]  }
   0xd   :  { %54 = dma.hbm_to_vmem [thread:$0]  %s47_s14, 2048, %s49_s16, [#allocation6], %s372_s19, %s372_s19, %s373_s20  }
   0xe   :  { %s63_s22 = sshll.u32 %s374_s21, 4  ;;  %s64_s22 = int_to_ptr.vmem [resolvable:$true] %s63_s22 }
   0xf   :  { %69 = dma.hbm_to_vmem [thread:$0]  %s62_s18, 2048, %s64_s22, [#allocation9], %s372_s19, %s372_s19, %s373_s20  }
  0x10   :  { %359 = dma.done.wait [#allocation3], 128  }
  0x11   :  { %360 = vsyncadd [#allocation3], 4294967168 }
  0x12   :  { %361 = dma.done.wait [#allocation6], 2176  }
  0x13   :  { %362 = vsyncadd [#allocation6], 4294965120 }
  0x14   :  { %363 = dma.done.wait [#allocation9], 2048  }
  0x15   :  { %364 = vsyncadd [#allocation9], 4294965248  ;;  %vm94_vm0 = vcmask 64512   ;;  %v89_v0 = vld [vmem:[#allocation5] sm:$0xff]  ;;  %v88_v1 = vld [vmem:[#allocation2] sm:$0xff]  ;;  %vm201_vm1 = vcmask 31744  }
  0x16   :  { %v134_v2 = vld [vmem:[#allocation7 + $0x78] sm:$0xff]  ;;  %113 = vmatpush.msra.mxu0 %v89_v0  ;;  %v133_v3 = vld [vmem:[#allocation7 + $0x70] sm:$0xff]  ;;  %v132_v4 = vld [vmem:[#allocation7 + $0x68] sm:$0xff] }
  0x17   :  { %139 = vmatpush.msra.mxu1 %v134_v2  ;;  %224 = vmatmul.msk.f32.vlgmr.msra.gmra.mxu0 %vm94_vm0, %v88_v1  ;;  %v131_v5 = vld [vmem:[#allocation7 + $0x60] sm:$0xff]  ;;  %v130_v6 = vld [vmem:[#allocation7 + $0x58] sm:$0xff]  ;;  %v129_v7 = vld [vmem:[#allocation7 + $0x50] sm:$0xff] }
  0x18   :  { %v128_v8 = vld [vmem:[#allocation7 + $0x48] sm:$0xff]  ;;  %v127_v9 = vld [vmem:[#allocation7 + $0x40] sm:$0xff]  ;;  %v126_v10 = vld [vmem:[#allocation7 + $0x38] sm:$0xff] }
  0x19   :  { %140 = vmatpush.msra.mxu1 %v133_v3  ;;  %v125_v11 = vld [vmem:[#allocation7 + $0x30] sm:$0xff]  ;;  %v124_v12 = vld [vmem:[#allocation7 + $0x28] sm:$0xff]  ;;  %v123_v13 = vld [vmem:[#allocation7 + $0x20] sm:$0xff] }
  0x1a   :  { %v122_v14 = vld [vmem:[#allocation7 + $0x18] sm:$0xff]  ;;  %v121_v15 = vld [vmem:[#allocation7 + $0x10] sm:$0xff]  ;;  %v120_v16 = vld [vmem:[#allocation7 + $0x8] sm:$0xff] }
  0x1b   :  { %141 = vmatpush.msra.mxu1 %v132_v4  ;;  %v119_v17 = vld [vmem:[#allocation7] sm:$0xff]  ;;  %v175_v18 = vld [vmem:[#allocation8 + $0x78] sm:$0xff]  ;;  %v174_v19 = vld [vmem:[#allocation8 + $0x70] sm:$0xff] }
  0x1c   :  { %180 = vmatpush.msra.mxu2 %v175_v18  ;;  %v173_v20 = vld [vmem:[#allocation8 + $0x68] sm:$0xff]  ;;  %v172_v21 = vld [vmem:[#allocation8 + $0x60] sm:$0xff]  ;;  %v171_v22 = vld [vmem:[#allocation8 + $0x58] sm:$0xff] }
  0x1d   :  { %142 = vmatpush.msra.mxu1 %v131_v5  ;;  %v170_v23 = vld [vmem:[#allocation8 + $0x50] sm:$0xff]  ;;  %v169_v24 = vld [vmem:[#allocation8 + $0x48] sm:$0xff]  ;;  %v168_v25 = vld [vmem:[#allocation8 + $0x40] sm:$0xff] }
  0x1e   :  { %181 = vmatpush.msra.mxu2 %v174_v19  ;;  %v167_v26 = vld [vmem:[#allocation8 + $0x38] sm:$0xff]  ;;  %v166_v27 = vld [vmem:[#allocation8 + $0x30] sm:$0xff]  ;;  %v165_v28 = vld [vmem:[#allocation8 + $0x28] sm:$0xff] }
  0x1f   :  { %143 = vmatpush.msra.mxu1 %v130_v6  ;;  %v164_v29 = vld [vmem:[#allocation8 + $0x20] sm:$0xff]  ;;  %v163_v30 = vld [vmem:[#allocation8 + $0x18] sm:$0xff]  ;;  %v234_v31 = vld [vmem:[%s448_s2] ss:$0 sm:$0xff] }
  0x20   :  { %182 = vmatpush.msra.mxu2 %v173_v20  ;;  %v162_v35 = vld [vmem:[#allocation8 + $0x10] sm:$0xff]  ;;  %v161_v36 = vld [vmem:[#allocation8 + $0x8] sm:$0xff]  ;;  %v160_v37 = vld [vmem:[#allocation8] sm:$0xff] }
  0x21   :  { %144 = vmatpush.msra.mxu1 %v129_v7  ;;  %v235_v38 = vld [vmem:[%s450_s4] ss:$0 sm:$0xff] }
  0x22   :  { %183 = vmatpush.msra.mxu2 %v172_v21  ;;  %v236_v42 = vld [vmem:[%s452_s6] ss:$0 sm:$0xff] }
  0x23   :  { %145 = vmatpush.msra.mxu1 %v128_v8 }
  0x24   :  { %184 = vmatpush.msra.mxu2 %v171_v22 }
  0x25   :  { %146 = vmatpush.msra.mxu1 %v127_v9 }
  0x26   :  { %185 = vmatpush.msra.mxu2 %v170_v23 }
  0x27   :  { %147 = vmatpush.msra.mxu1 %v126_v10 }
  0x28   :  { %186 = vmatpush.msra.mxu2 %v169_v24 }
  0x29   :  { %148 = vmatpush.msra.mxu1 %v125_v11 }
  0x2a   :  { %187 = vmatpush.msra.mxu2 %v168_v25 }
  0x2b   :  { %149 = vmatpush.msra.mxu1 %v124_v12 }
  0x2c   :  { %188 = vmatpush.msra.mxu2 %v167_v26 }
  0x2d   :  { %150 = vmatpush.msra.mxu1 %v123_v13 }
  0x2e   :  { %189 = vmatpush.msra.mxu2 %v166_v27 }
  0x2f   :  { %151 = vmatpush.msra.mxu1 %v122_v14 }
  0x30   :  { %190 = vmatpush.msra.mxu2 %v165_v28 }
  0x31   :  { %152 = vmatpush.msra.mxu1 %v121_v15 }
  0x32   :  { %191 = vmatpush.msra.mxu2 %v164_v29 }
  0x33   :  { %153 = vmatpush.msra.mxu1 %v120_v16 }
  0x34   :  { %192 = vmatpush.msra.mxu2 %v163_v30 }
  0x35   :  { %154 = vmatpush.msra.mxu1 %v119_v17 }
  0x36   :  { %193 = vmatpush.msra.mxu2 %v162_v35 }
  0x38   :  { %194 = vmatpush.msra.mxu2 %v161_v36 }
  0x3a   :  { %195 = vmatpush.msra.mxu2 %v160_v37 }
  0x94   :  { %v115_v32 = vpop.f32.mrf.mxu0 }
  0x95   :  { %v116_v33 = vadd.f32 %v234_v31, %v115_v32 }
  0x97   :  { %v118_v34 = vmax.f32 %v116_v33, 0.0 }
  0x99   :  { %155 = vmatmul.f32.vlgmr.msra.gmra.mxu1 %v118_v34 }
 0x116   :  { %v156_v39 = vpop.f32.mrf.mxu1 }
 0x117   :  { %v157_v40 = vadd.f32 %v235_v38, %v156_v39 }
 0x119   :  { %v159_v41 = vmax.f32 %v157_v40, 0.0 }
 0x11b   :  { %196 = vmatmul.f32.vlgmr.msra.gmra.mxu2 %v159_v41 }
 0x19e   :  { %v197_v43 = vpop.f32.mrf.mxu2 }
 0x19f   :  { %v198_v44 = vadd.f32 %v236_v42, %v197_v43 }
 0x1a1   :  { %237 = vtanh.f32 %v198_v44 }
 0x1a7   :  { %v238_v45 = vpop.eup %237 }
 0x1a8   :  { %202 = vst.msk [vmem:[#allocation10] sm:$0xff] %vm201_vm1, %v238_v45 }
 0x1a9   :  { %206 = vsyncadd [#allocation4], 96  ;;  %s209_s28 = sshll.u32 %s453_s7, 4  ;;  %s375_s4 = smov [#allocation10]   ;;  %s210_s28 = int_to_ptr.hbm [resolvable:$true] %s209_s28 }
 0x1aa   :  { %s207_s29 = sshll.u32 %s375_s4, 4  ;;  %s208_s29 = int_to_ptr.vmem [resolvable:$true] %s207_s29 }
 0x1ab   :  { %215 = dma.vmem_to_hbm [thread:$0]  %s208_s29, 32, %s210_s28, [#allocation4], %s369_s11, %s369_s11, %s370_s12  }
 0x1ac   :  { %365 = dma.done.wait [#allocation4], 128  }
 0x1ad   :  { %366 = vsyncadd [#allocation4], 4294967168 }
 0x1ae   :  { %220 = vsyncpa [#allocation3], 1 }
 0x1af   :  { %221 = vsyncpa [#allocation6], 1 }
 0x1b0   :  { %222 = vsyncpa [#allocation9], 1 }
 0x1b1   :  { %223 = vsyncpa [#allocation4], 1 }

</bundles_post_ra>
